<compile_context>
chip_gen: v7x
topology: tpu7x:2x2x1
jax: 0.10.0
libtpu: 0.0.40
codegen_flags: <defaults>
</compile_context>

<pallas_src>
import jax
import jax.numpy as jnp
from jax import lax
from jax.experimental import pallas as pl
from jax.experimental.pallas import tpu as pltpu


_UNROLL_K = 16  # trace-unroll the threshold passes fully up to this many passes


def _make_topk_kernel(k: int):
    """k is a static int >= 1 (and < D).  Returns the kernel body."""

    def kernel(x_ref, o_ref):
        x = x_ref[...]                                   # (tm, D), input dtype
        neg_inf = jnp.array(-jnp.inf, dtype=x.dtype)

        # Read-only threshold carry: pass i yields the (i+1)-th largest
        # (distinct) row value.  The tile itself is never rewritten, so there
        # is no per-pass vst traffic; each pass is cmp + select + XLU row-max.
        thresh = jnp.max(x, axis=-1, keepdims=True)      # 1st largest

        def one_pass(th):
            below = jnp.where(x < th, x, neg_inf)        # strictly-below values
            return jnp.max(below, axis=-1, keepdims=True)

        if k - 1 <= _UNROLL_K:
            for _ in range(k - 1):
                thresh = one_pass(thresh)
        else:
            # Bounded body keeps program size / compile time in check for
            # large k while staying correct.
            # TODO(synk): for k >= ~32 a count-based bitwise-bisection
            # threshold search would decouple cost from k (VALU-bound regime,
            # reached earliest on v7x and for bf16 on v5e).
            thresh = lax.fori_loop(0, k - 1, lambda i, th: one_pass(th), thresh)

        # Fused ReLU epilogue (2 VALU ops/elem): identical output to
        # ((x >= thresh) & (x > 0)) ? x : 0, since any kept negative value
        # would ReLU to 0 anyway.
        thresh_pos = jnp.maximum(thresh, 0)              # (tm, 1), negligible
        o_ref[...] = jnp.where(x >= thresh_pos, x, jnp.zeros_like(x))

    return kernel


def _vmem_sizing():
    """Generation-aware (scoped_vmem_limit, per-step tile budget) in bytes."""
    try:
        cap = int(pltpu.get_tpu_info().vmem_capacity_bytes)
    except Exception:
        cap = 64 * 1024 * 1024                 # conservative: v7x per-TC size
    # Leave headroom for compiler scratch; never ask for more than 64 MiB.
    vmem_limit = min((cap * 3) // 4, 64 * 1024 * 1024)   # v5e/v6e: 64M, v7x: 48M
    budget = vmem_limit // 3                              # ~21M / ~16M per step
    return vmem_limit, budget


def topk_activation(x: jax.Array, k: int) -> jax.Array:
    """Pallas TPU implementation of the TopK module forward pass."""
    orig_shape = x.shape
    D = orig_shape[-1]

    if k <= 0:
        return jnp.zeros_like(x)
    k_eff = min(int(k), D)                     # torch.topk requires k <= D
    if k_eff >= D:
        # Keeping every element: the module degenerates to plain ReLU.
        return jnp.maximum(x, 0)

    x2 = x.reshape(-1, D)
    N = x2.shape[0]
    elt = x2.dtype.itemsize

    vmem_limit, budget_bytes = _vmem_sizing()

    # Per-row VMEM bytes per pipelined grid step: 2x input + 2x output double
    # buffers at the input dtype, plus headroom for in-kernel temporaries
    # (conservative: bf16 compares widen to f32 on v5e).
    bytes_per_row = D * (4 * elt + 8)
    tm = max(8, (budget_bytes // bytes_per_row) // 8 * 8)
    tm = min(tm, 512)
    tm = min(tm, ((N + 7) // 8) * 8)           # never exceed (rounded-up) N
    # Ensure >= 2 row blocks when possible so the "parallel" axis can shard
    # across both v7x TensorCores (negligible cost on single-TC chips).
    if N > 8:
        half = ((pl.cdiv(N, 2) + 7) // 8) * 8
        if half < N:
            tm = min(tm, half)
    tm = max(8, tm)

    n_blocks = pl.cdiv(N, tm)
    # No padding / slicing for ragged N: Pallas clips the last partial block
    # (out-of-range rows read garbage, compute per-row, and their writebacks
    # are dropped), avoiding an extra full HBM read+write.

    cost = pl.CostEstimate(
        flops=3 * k_eff * N * D + 2 * N * D,   # ~3 VALU ops/elem/pass + epilogue
        bytes_accessed=2 * N * D * elt,
        transcendentals=0,
    )

    out2 = pl.pallas_call(
        _make_topk_kernel(k_eff),
        out_shape=jax.ShapeDtypeStruct((N, D), x2.dtype),
        grid_spec=pltpu.PrefetchScalarGridSpec(
            num_scalar_prefetch=0,
            grid=(n_blocks,),
            in_specs=[pl.BlockSpec((tm, D), lambda i: (i, 0))],
            out_specs=pl.BlockSpec((tm, D), lambda i: (i, 0)),
        ),
        compiler_params=pltpu.CompilerParams(
            dimension_semantics=("parallel",),
            vmem_limit_bytes=vmem_limit,
        ),
        cost_estimate=cost,
    )(x2)

    return out2.reshape(orig_shape)


def topk_reference(x: jax.Array, k: int) -> jax.Array:
    """Pure-JAX reference (threshold formulation; matches torch for distinct values)."""
    k_eff = min(k, x.shape[-1])
    vals, _ = jax.lax.top_k(x, k_eff)
    kth = vals[..., -1:]
    return jnp.where(x >= kth, jnp.maximum(x, 0), jnp.zeros_like(x))


if __name__ == "__main__":
    key = jax.random.PRNGKey(0)

    # Test 1: SAE-like latent activation (batch=2, seq=8, hidden=32), k=4.
    batch, seq, hidden = 2, 8, 32
    x = jax.random.normal(key, (batch, seq, hidden), dtype=jnp.float32)
    out = jax.block_until_ready(topk_activation(x, 4))
    ref = topk_reference(x, 4)
    assert out.shape == x.shape and out.dtype == x.dtype
    assert jnp.allclose(out, ref, atol=1e-6), "TopK mismatch (test 1)"

    # Test 2: ragged row count (exercises the clipped last block), D=128, k=5.
    x2 = jax.random.normal(jax.random.PRNGKey(1), (13, 128), dtype=jnp.float32)
    out2 = jax.block_until_ready(topk_activation(x2, 5))
    assert jnp.allclose(out2, topk_reference(x2, 5), atol=1e-6), "TopK mismatch (test 2)"

    # Test 3: larger k exercises the fori_loop threshold path (k-1 > 16).
    x3 = jax.random.normal(jax.random.PRNGKey(2), (16, 256), dtype=jnp.float32)
    out3 = jax.block_until_ready(topk_activation(x3, 20))
    assert jnp.allclose(out3, topk_reference(x3, 20), atol=1e-6), "TopK mismatch (test 3)"

    # Test 4: k >= D short-circuit (plain ReLU).
    out4 = jax.block_until_ready(topk_activation(x, 64))
    assert jnp.allclose(out4, jnp.maximum(x, 0), atol=1e-6), "TopK mismatch (test 4)"

    print("KERNEL_OK")
</pallas_src>

<mosaic_0001>
module attributes {stable_mosaic.version = 11 : i64} {
  func.func @kernel(%arg0: i32, %arg1: memref<8x32xf32, #tpu.memory_space<vmem>>, %arg2: memref<8x32xf32, #tpu.memory_space<vmem>>) attributes {dimension_semantics = [#tpu.dimension_semantics<parallel>], iteration_bounds = array<i64: 2>, scalar_prefetch = 0 : i64, scratch_operands = 0 : i64, tpu.core_type = #tpu.core_type<tc>, window_params = [{transform_indices = @transform_0, window_bounds = array<i64: 8, 32>}, {transform_indices = @transform_1, window_bounds = array<i64: 8, 32>}]} {
    %c0 = arith.constant 0 : index
    %c0_0 = arith.constant 0 : index
    %0 = vector.load %arg1[%c0, %c0_0] : memref<8x32xf32, #tpu.memory_space<vmem>>, vector<8x32xf32>
    %cst = arith.constant dense<0xFF800000> : vector<8xf32>
    %1 = vector.multi_reduction <maximumf>, %0, %cst [1] : vector<8x32xf32> to vector<8xf32>
    %2 = vector.shape_cast %1 : vector<8xf32> to vector<8x1xf32>
    %3 = vector.broadcast %2 : vector<8x1xf32> to vector<8x32xf32>
    %4 = arith.cmpf olt, %0, %3 : vector<8x32xf32>
    %cst_1 = arith.constant 0xFF800000 : f32
    %5 = vector.broadcast %cst_1 : f32 to vector<8x32xf32>
    %6 = arith.select %4, %0, %5 : vector<8x32xi1>, vector<8x32xf32>
    %cst_2 = arith.constant dense<0xFF800000> : vector<8xf32>
    %7 = vector.multi_reduction <maximumf>, %6, %cst_2 [1] : vector<8x32xf32> to vector<8xf32>
    %8 = vector.shape_cast %7 : vector<8xf32> to vector<8x1xf32>
    %9 = vector.broadcast %8 : vector<8x1xf32> to vector<8x32xf32>
    %10 = arith.cmpf olt, %0, %9 : vector<8x32xf32>
    %cst_3 = arith.constant 0xFF800000 : f32
    %11 = vector.broadcast %cst_3 : f32 to vector<8x32xf32>
    %12 = arith.select %10, %0, %11 : vector<8x32xi1>, vector<8x32xf32>
    %cst_4 = arith.constant dense<0xFF800000> : vector<8xf32>
    %13 = vector.multi_reduction <maximumf>, %12, %cst_4 [1] : vector<8x32xf32> to vector<8xf32>
    %14 = vector.shape_cast %13 : vector<8xf32> to vector<8x1xf32>
    %15 = vector.broadcast %14 : vector<8x1xf32> to vector<8x32xf32>
    %16 = arith.cmpf olt, %0, %15 : vector<8x32xf32>
    %cst_5 = arith.constant 0xFF800000 : f32
    %17 = vector.broadcast %cst_5 : f32 to vector<8x32xf32>
    %18 = arith.select %16, %0, %17 : vector<8x32xi1>, vector<8x32xf32>
    %cst_6 = arith.constant dense<0xFF800000> : vector<8xf32>
    %19 = vector.multi_reduction <maximumf>, %18, %cst_6 [1] : vector<8x32xf32> to vector<8xf32>
    %20 = vector.shape_cast %19 : vector<8xf32> to vector<8x1xf32>
    %cst_7 = arith.constant 0.000000e+00 : f32
    %21 = vector.broadcast %cst_7 : f32 to vector<8x1xf32>
    %22 = arith.maximumf %20, %21 : vector<8x1xf32>
    %23 = vector.broadcast %22 : vector<8x1xf32> to vector<8x32xf32>
    %24 = arith.cmpf oge, %0, %23 : vector<8x32xf32>
    %cst_8 = arith.constant 0.000000e+00 : f32
    %25 = vector.broadcast %cst_8 : f32 to vector<8x32xf32>
    %26 = arith.select %24, %0, %25 : vector<8x32xi1>, vector<8x32xf32>
    %c0_9 = arith.constant 0 : index
    %c0_10 = arith.constant 0 : index
    %27 = vector.load %arg2[%c0_9, %c0_10] : memref<8x32xf32, #tpu.memory_space<vmem>>, vector<8x32xf32>
    tpu.vector_store %arg2[%c0_9, %c0_10], %26 {strides = array<i32>} : memref<8x32xf32, #tpu.memory_space<vmem>>, vector<8x32xf32>,
    return
  }
  func.func @transform_0(%arg0: i32) -> (i32, i32) {
    %c0_i32 = arith.constant 0 : i32
    %c0_i32_0 = arith.constant 0 : i32
    return %arg0, %c0_i32 : i32, i32
  }
  func.func @transform_1(%arg0: i32) -> (i32, i32) {
    %c0_i32 = arith.constant 0 : i32
    %c0_i32_0 = arith.constant 0 : i32
    return %arg0, %c0_i32 : i32, i32
  }
}

</mosaic_0001>

<bundles_post_ra>
// kernel: tpu_custom_call.1
= control target key start
LH: loop header
LB: loop body
LE: loop exit
PB: predicated region body
PF: predicated region fallthrough
CT: control target
= control target key end

     0   :  { %6 = vsyncpa [#allocation3], 0  ;;  %s574_s0 = inlined_call_operand.hbm [shape: f32[16,32], index: 0, kind: input, shape index: {}]   ;;  %s575_s1 = inlined_call_operand.hbm [shape: f32[16,32], index: 1, kind: output, shape index: {}]  }
   0x1   :  { %8 = vsyncpa [#allocation3 + $0x1], 0 }
   0x2   :  { %9 = vsyncpa [#allocation4], 0 }
   0x3   :  { %11 = vsyncpa [#allocation4 + $0x1], 0  ;;  %s408_s6 = smov 0   ;;  %s410_s7 = smov 0  }
   0x4   :  { %s412_s8 = smov 0   ;;  %s414_s9 = smov 0  }
   0x5 LB: > { %s429_s10 = sadd.s32 4294967295, %s394_s9   ;;  %s240_s11 = sadd.s32 4294967294, %s394_s9   ;;  %s394_s9 = sphi %s414_s9, %s590_s9   ;;  %s390_s8 = sphi %s412_s8, %s589_s8   ;;  %s386_s7 = sphi %s410_s7, %s588_s7   ;;  %s382_s6 = sphi %s408_s6, %s587_s6  }
   0x6   : > { %s433_s12 = sadd.s32 1, %s394_s9   ;;  %s24_s13 = sadd.s32 1, %s390_s8 }
   0x7   : > { %s21_s14 = ssub.s32 %s394_s9, %s433_s12  ;;  %p31_p0 = scmp.ne.s32.totalorder %s390_s8, %s386_s7 }
   0x8   : > { %p22_p1 = scmp.eq.s32.totalorder %s21_s14, 0  ;;  %p32_p2 = scmp.eq.s32.totalorder %s394_s9, 0 }
   0x9   : > { %p37_p3 = scmp.ne.s32.totalorder %s386_s7, %s382_s6  ;;  %p38_p4 = scmp.eq.s32.totalorder %s429_s10, 0 }
   0xa   : > { %s445_s15 = scalar_select %p22_p1, %s390_s8, %s24_s13  }
   0xb   : > { %p447_p5 = por %p32_p2, %p31_p0  ;;  %p451_p6 = por %p38_p4, %p37_p3 }
   0xc   : > { %p61_p7 = scmp.eq.s32.totalorder %s429_s10, 1  ;;  %p67_p8 = scmp.eq.s32.totalorder %s240_s11, 1 }
   0xd   : > { %p264_p10 = scmp.lt.s32.totalorder %s394_s9, 2  ;;  %s87_s20 = sand.u32 1, %s390_s8  }
   0xe   : > { %p458_p11 = por %p61_p7, %p31_p0  ;;  %p462_p12 = por %p67_p8, %p37_p3 }
   0xf   : > { %s244_s21 = sshll.u32 %s394_s9, 7  ;;  %s243_s22 = sshll.u32 %s87_s20, 3 }
  0x10   : > { %s579_s18 = scalar_select %p458_p11, 1, 0 }
  0x11   : > { %s580_s19 = scalar_select %p462_p12, 1, 0 }
  0x12   : > { %s471_s25 = scalar_lea.hbm %s574_s0, %s244_s21  ;;  %s91_s26 = scalar_lea.vmem [#allocation2], %s243_s22 }
  0x13   : > { %s98_s27 = sshll.u32 %s91_s26, 4  ;;  %p475_p13 = pnand %p264_p10, %p447_p5  ;;  %s479_s27 = int_to_ptr.vmem [resolvable:$true] %s98_s27 }
  0x14   : > { %s88_s29 = scalar_lea.sflag [#allocation3], %s87_s20  ;;  %s298_s30 = scalar_lea.hbm %s471_s25, 128 }
  0x15   : > { %p299_p2 = scmp.ne.s32.totalorder %s471_s25, %s298_s30  ;;  %p300_p3 = pneg %p475_p13 }
  0x16   : > { %s303_s4 = scalar_lea.hbm %s574_s0, 256  ;;  %p304_p5 = scmp.lt.u32.totalorder %s471_s25, %s574_s0 }
  0x17   : > { %p301_p4 = pnand %p300_p3, %p299_p2  ;;  %p305_p8 = scmp.lt.u32.totalorder %s303_s4, %s298_s30 }
  0x18   : > { %p307_p9 = scmp.lt.u32.totalorder %s298_s30, %s471_s25 }
  0x19   : > { %p302_p7 = pneg %p301_p4  ;;  %p306_p10 = por %p305_p8, %p304_p5 }
  0x1b   : > { %p308_p0 = por %p307_p9, %p306_p10 }
  0x1d   : > { %p309_p1 = pnand %p308_p0, %p302_p7 }
  0x1f   : > { %312 = shalt.err (!%p309_p1)
}
  0x20   : > { %s313_s13 = scalar_lea.vmem %s479_s27, 128  ;;  %s396_s14 = smov [#allocation2]  }
  0x21   : > { %p314_p2 = scmp.ne.s32.totalorder %s479_s27, %s313_s13  ;;  %s318_s16 = sshll.u32 %s396_s14, 4  ;;  %s319_s16 = int_to_ptr.vmem [resolvable:$false] %s318_s16 }
  0x22   : > { %s320_s20 = scalar_lea.vmem %s319_s16, 256  ;;  %p321_p11 = scmp.lt.s32.totalorder %s479_s27, %s319_s16 }
  0x23   : > { %p316_p4 = pnand %p314_p2, %p300_p3  ;;  %p322_p5 = scmp.lt.s32.totalorder %s320_s20, %s313_s13 }
  0x25   : > { %p317_p12 = pneg %p316_p4  ;;  %p323_p8 = por %p322_p5, %p321_p11 }
  0x27   : > { %p324_p9 = pnand %p323_p8, %p317_p12 }
  0x29   : > { %327 = shalt.err (!%p324_p9)
}
  0x2a   : > { %259 = dma.hbm_to_vmem [thread:$0]  (!%p475_p13), %s471_s25, 128, %s479_s27, %s88_s29  }
  0x2b   : > { %p582_p0 = scmp.lt.s32.totalorder %s394_s9, 3  ;;  %p583_p1 = scmp.ge.s32.totalorder %s394_s9, 1 }
  0x2d   : > { %p104_p3 = pnand %p583_p1, %p582_p0 }
  0x2e   : > { %s513_s21 = sand.u32 (!%p104_p3), 1, %s386_s7  }
  0x2f   : > { %107 = sbr.rel (%p104_p3) target bundleno = 652 (0x28c), region = 24  ;;  %s246_s22 = sshll.u32 (!%p104_p3), %s513_s21, 3 }
  0x30   : > { %s110_s23 = scalar_lea.sflag (!%p104_p3), [#allocation3], %s513_s21  ;;  %s113_s24 = scalar_lea.vmem (!%p104_p3), [#allocation2], %s246_s22 }
  0x36   : > { %373 = dma.done.wait (%p451_p6), %s110_s23, 128  }
  0x37   : > { %375 = vsyncadd (%p451_p6), %s110_s23, 4294967168  ;;  %vm133_vm0 = vcmask 261120   ;;  %v132_v0 = vld [vmem:[%s113_s24] sm:$0xff]  ;;  %s249_s17 = sshll.u32 %s429_s10, 7  ;;  %s131_s25 = scalar_lea.vmem [#allocation5], %s246_s22 }
  0x38   : > { %v134_v1 = vsel %vm133_vm0, %v132_v0, -inf  ;;  %s170_s26 = sshll.u32 %s131_s25, 4  ;;  %s529_s29 = scalar_lea.hbm %s575_s1, %s249_s17  ;;  %s531_s26 = int_to_ptr.vmem [resolvable:$true] %s170_s26 }
  0x39   : > { %135 = vmax.xlane.f32.xlu0 %v134_v1  ;;  %s157_s30 = scalar_lea.sflag [#allocation4], %s513_s21  ;;  %s328_s2 = scalar_lea.vmem %s531_s26, 128 }
  0x3a   : > { %p329_p6 = scmp.ne.s32.totalorder %s531_s26, %s328_s2  ;;  %p584_p11 = scmp.ne.s32.totalorder %s579_s18, 0 }
  0x3b   : > { %s397_s10 = smov [#allocation5]  }
  0x3c   : > { %p330_p12 = pnand %p329_p6, %p584_p11  ;;  %s332_s3 = sshll.u32 %s397_s10, 4  ;;  %s333_s3 = int_to_ptr.vmem [resolvable:$false] %s332_s3 }
  0x3d   : > { %s334_s4 = scalar_lea.vmem %s333_s3, 256  ;;  %p335_p7 = scmp.lt.s32.totalorder %s531_s26, %s333_s3 }
  0x3e   : > { %p331_p13 = pneg %p330_p12  ;;  %p336_p10 = scmp.lt.s32.totalorder %s334_s4, %s328_s2 }
  0x40   : > { %p337_p2 = por %p336_p10, %p335_p7 }
  0x42   : > { %p338_p4 = pnand %p337_p2, %p331_p13 }
  0xc6   : > { %v136_v2 = vpop.xlane.xlu0 %135 }
  0xc7   : > { %vm137_vm1 = vcmp.lt.f32.partialorder %v132_v0, %v136_v2 }
  0xc8   : > { %v138_v3 = vsel %vm137_vm1, %v132_v0, -inf }
  0xc9   : > { %v139_v4 = vsel %vm133_vm0, %v138_v3, -inf }
  0xca   : > { %140 = vmax.xlane.f32.xlu0 %v139_v4 }
 0x157   : > { %v141_v5 = vpop.xlane.xlu0 %140 }
 0x158   : > { %vm142_vm2 = vcmp.lt.f32.partialorder %v132_v0, %v141_v5 }
 0x159   : > { %v143_v6 = vsel %vm142_vm2, %v132_v0, -inf }
 0x15a   : > { %v144_v7 = vsel %vm133_vm0, %v143_v6, -inf }
 0x15b   : > { %145 = vmax.xlane.f32.xlu1 %v144_v7 }
 0x1e8   : > { %v146_v8 = vpop.xlane.xlu1 %145 }
 0x1e9   : > { %vm147_vm3 = vcmp.lt.f32.partialorder %v132_v0, %v146_v8 }
 0x1ea   : > { %v148_v9 = vsel %vm147_vm3, %v132_v0, -inf }
 0x1eb   : > { %v149_v10 = vsel %vm133_vm0, %v148_v9, -inf }
 0x1ec   : > { %150 = vmax.xlane.f32.xlu1 %v149_v10 }
 0x279   : > { %v151_v11 = vpop.xlane.xlu1 %150 }
 0x27a   : > { %v152_v12 = vmax.f32 %v151_v11, 0.0 }
 0x27c   : > { %vm153_vm4 = vcmp.ge.f32.partialorder %v132_v0, %v152_v12 }
 0x27d   : > { %v154_v13 = vsel %vm153_vm4, %v132_v0, 0.0 }
 0x27e   : > { %155 = vst.msk [vmem:[%s131_s25] sm:$0xff] %vm133_vm0, %v154_v13 }
 0x27f   : > { %341 = shalt.err (!%p338_p4)
}
 0x280   : > { %s342_s5 = scalar_lea.hbm %s529_s29, 128  ;;  %s346_s14 = scalar_lea.hbm %s575_s1, 256 }
 0x281   : > { %p343_p5 = scmp.ne.s32.totalorder %s529_s29, %s342_s5  ;;  %p347_p0 = scmp.lt.u32.totalorder %s529_s29, %s575_s1 }
 0x282   : > { %p348_p1 = scmp.lt.u32.totalorder %s346_s14, %s342_s5  ;;  %p350_p6 = scmp.lt.u32.totalorder %s342_s5, %s529_s29 }
 0x283   : > { %p344_p8 = pnand %p343_p5, %p584_p11 }
 0x284   : > { %p349_p3 = por %p348_p1, %p347_p0 }
 0x285   : > { %p345_p9 = pneg %p344_p8 }
 0x286   : > { %p351_p12 = por %p350_p6, %p349_p3 }
 0x288   : > { %p352_p13 = pnand %p351_p12, %p345_p9 }
 0x28a   : > { %355 = shalt.err (!%p352_p13)
}
 0x28b   : > { %254 = dma.vmem_to_hbm [thread:$0]  (%p584_p11), %s531_s26, 128, %s529_s29, %s157_s30  }
 0x28c PF: > { %s182_s21 = sand.u32 1, %s382_s6   ;;  %p585_p7 = scmp.ne.s32.totalorder %s580_s19, 0 }
 0x28d   : > { %p586_p10 = scmp.ge.s32.totalorder %s394_s9, 2  ;;  %s183_s22 = scalar_lea.sflag [#allocation4], %s182_s21 }
 0x28f   : > { %p261_p2 = pnand %p586_p10, %p585_p7 }
 0x291   : > { %377 = dma.done.wait (!%p261_p2), %s183_s22, 128  }
 0x292   : > { %379 = vsyncadd (!%p261_p2), %s183_s22, 4294967168  ;;  %p14_p4 = scmp.ge.s32.totalorder %s433_s12, 4   ;;  %s587_s6 = smov %s386_s7 }
 0x293   : > { %s588_s7 = smov %s390_s8  ;;  %s589_s8 = smov %s445_s15 }
 0x294   : > { %s590_s9 = smov %s433_s12  ;;  %16 = sbr.rel (!%p14_p4) target bundleno = 5 (0x5), region = 69 }
 0x29b   :  { %188 = vsyncpa [#allocation3], 1 }
 0x29c   :  { %190 = vsyncpa [#allocation3 + $0x1], 1 }
 0x29d   :  { %191 = vsyncpa [#allocation4], 1 }
 0x29e   :  { %193 = vsyncpa [#allocation4 + $0x1], 1 }

</bundles_post_ra>
